<compile_context>
chip_gen: v7x
topology: tpu7x:2x2x1
jax: 0.10.0
libtpu: 0.0.40
codegen_flags: <defaults>
</compile_context>

<pallas_src>
import jax
import jax.numpy as jnp
from jax.experimental import pallas as pl
from jax.experimental.pallas import tpu as pltpu

# Finite "minus infinity": keeps exp()/max() NaN-free even for fully masked
# columns and the first online-softmax step.
_MASK_VALUE = -1e30


def _round_up(x, m):
    return ((x + m - 1) // m) * m


def _sublane_multiple(dtype):
    # 8 rows for 4-byte dtypes, 16 for 2-byte, 32 for 1-byte (sublane packing).
    return max(8, 32 // jnp.dtype(dtype).itemsize)


def _largest_aligned_divisor(n, target, align):
    """Largest multiple of `align` that divides `n` and is <= `target`, or None."""
    t = (min(target, n) // align) * align
    while t >= align:
        if n % t == 0:
            return t
        t -= align
    return None


def _vmem_budget_bytes():
    """Generation-aware VMEM budget: ~3/4 of physical capacity
    (~96 MiB on v5e/v6e, ~48 MiB on v7x), leaving headroom for Mosaic
    internal scratch and semaphores."""
    cap = None
    try:
        cap = getattr(pltpu.get_tpu_info(), "vmem_capacity_bytes", None)
    except Exception:
        cap = None
    if not cap:
        cap = 64 << 20  # conservative (v7x-sized) fallback
    return (int(cap) * 3) // 4


def _eup_supports_bf16():
    """v6e / v7x EUPs have a bf16 transcendental path; v5e and older do not."""
    try:
        kind = jax.devices()[0].device_kind.lower()
    except Exception:
        return True
    return not any(t in kind for t in ("v2", "v3", "v4", "v5"))


def _make_attend_kernel(H, tq, tkv, D, n_valid, needs_mask, compute_dtype, exp_dtype):
    scale = float(D) ** -0.5

    def kernel(q_ref, k_ref, v_ref, o_ref, m_sc, l_sc, acc_sc):
        # q_ref: (1, H, tq, D)   one batch tile, all heads stacked
        # k_ref: (1, tkv, D)     one KV tile (shared across heads)
        # v_ref: (1, tkv, D)
        # o_ref: (1, H, tq, D)
        kv_idx = pl.program_id(2)

        @pl.when(kv_idx == 0)
        def _init():
            m_sc[...] = jnp.full_like(m_sc, _MASK_VALUE)
            l_sc[...] = jnp.zeros_like(l_sc)
            acc_sc[...] = jnp.zeros_like(acc_sc)

        # Heads stacked on the MXU M axis: one grid step covers all H heads.
        q = q_ref[0].reshape(H * tq, D)
        k = k_ref[0]
        v = v_ref[0]

        # Scale q (H*tq*D mults) instead of the score tile (H*tq*tkv); the
        # scale is folded into the compute-dtype cast.  (Recomputed per kv
        # step; VALU is not the binding slot here — see review notes.)
        qs = q.astype(compute_dtype) * jnp.asarray(scale, compute_dtype)

        # s[i, j] = sum_d qs[i, d] * k[j, d]  — MXU matmul, f32 accumulation.
        s = jax.lax.dot_general(
            qs, k.astype(compute_dtype),
            dimension_numbers=(((1,), (1,)), ((), ())),
            preferred_element_type=jnp.float32,
        )  # (H*tq, tkv) f32

        if needs_mask:
            col = kv_idx * tkv + jax.lax.broadcasted_iota(jnp.int32, (1, tkv), 1)
            s = jnp.where(col < n_valid, s, _MASK_VALUE)

        # Online (flash-style) softmax update; m / l / acc stay f32.
        m_prev = m_sc[...]
        m_new = jnp.maximum(m_prev, jnp.max(s, axis=-1, keepdims=True))
        alpha = jnp.exp(m_prev - m_new)
        # exp in exp_dtype (bf16 on v6e/v7x when computing in bf16 — the
        # single EUP slot is the likely binding unit for D <= ~256).
        p = jnp.exp((s - m_new).astype(exp_dtype))
        l_sc[...] = alpha * l_sc[...] + jnp.sum(
            p.astype(jnp.float32), axis=-1, keepdims=True)
        acc_sc[...] = alpha * acc_sc[...] + jax.lax.dot_general(
            p.astype(compute_dtype), v.astype(compute_dtype),
            dimension_numbers=(((1,), (0,)), ((), ())),
            preferred_element_type=jnp.float32,
        )
        m_sc[...] = m_new

        @pl.when(kv_idx == pl.num_programs(2) - 1)
        def _finalize():
            # Exact reciprocal: runs once per (b, q-tile), so the approximate
            # EUP path would buy nothing and cost accuracy.
            inv_l = pl.reciprocal(l_sc[...], approx=False)
            o_ref[0] = (acc_sc[...] * inv_l).reshape(H, tq, D).astype(o_ref.dtype)

    return kernel


def attend(q, k, v, *, compute_dtype=None, q_tile=None, kv_tile=None):
    """q: (B, H, N, D); k, v: (B, N, D).  Returns (B, H, N, D) in q's dtype."""
    B, H, N, D = q.shape
    assert k.shape == (B, N, D) and v.shape == (B, N, D), (q.shape, k.shape, v.shape)
    out_dtype = q.dtype

    # MXU operand dtype.  f32 inputs are downcast to bf16 by default: f32
    # matmuls run at a small fraction of the bf16 MXU rate (the v7x MXU is
    # bf16/fp8 centric) and double the VMEM/DMA bytes.  Pass
    # compute_dtype=jnp.float32 for a full-precision path.
    if compute_dtype is None:
        compute_dtype = jnp.bfloat16 if jnp.dtype(q.dtype).itemsize >= 4 else q.dtype
    compute_dtype = jnp.dtype(compute_dtype)
    exp_dtype = (jnp.bfloat16
                 if compute_dtype == jnp.dtype(jnp.bfloat16) and _eup_supports_bf16()
                 else jnp.float32)

    # Cast once in the wrapper: K/V are re-streamed (N / tq) times by the
    # kernel, so narrowing them here halves every one of those HBM reads.
    if jnp.dtype(q.dtype) != compute_dtype:
        q = q.astype(compute_dtype)
    if jnp.dtype(k.dtype) != compute_dtype:
        k = k.astype(compute_dtype)
        v = v.astype(compute_dtype)

    itemsize = jnp.dtype(q.dtype).itemsize
    kv_isz = jnp.dtype(k.dtype).itemsize
    out_isz = jnp.dtype(out_dtype).itemsize
    sub = _sublane_multiple(q.dtype)

    # ---- KV tile: it becomes the lane axis of the score tile -> keep it a
    # multiple of 128 (pad + mask awkward N instead of falling back to N).
    kv_target = max(128, kv_tile or 512)
    if N <= kv_target:
        tkv, n_kv = N, N
    else:
        n_kv = _round_up(N, 128)
        tkv = _largest_aligned_divisor(n_kv, kv_target, 128)  # always exists
    needs_mask = n_kv != N

    # ---- Q tile: largest tile whose working set fits the per-chip budget.
    budget = _vmem_budget_bytes()
    kv_blk_bytes = 2 * 2 * tkv * D * kv_isz                 # k + v, double-buffered
    per_row = H * D * (2 * itemsize + 2 * out_isz + 4) + 8 * H  # q, out, acc, m+l
    avail = budget - kv_blk_bytes - (4 << 20)               # slack for Mosaic internals
    q_target = q_tile or 1024
    tq_cap = max(sub, min(q_target, avail // per_row))
    tq_cap = max(sub, (tq_cap // sub) * sub)
    if N <= tq_cap:
        tq, n_q = N, N
    else:
        d = _largest_aligned_divisor(N, tq_cap, sub)
        if d is not None and 2 * d >= tq_cap:
            tq, n_q = d, N          # exact divisor, no padded q rows
        else:
            tq = tq_cap             # pad q rather than shrinking the tile
            n_q = _round_up(N, tq)

    # Zero-pad awkward sequence lengths (single XLA pass, only when needed).
    if n_q != N:
        q = jnp.pad(q, ((0, 0), (0, 0), (0, n_q - N), (0, 0)))
    if n_kv != N:
        k = jnp.pad(k, ((0, 0), (0, n_kv - N), (0, 0)))
        v = jnp.pad(v, ((0, 0), (0, n_kv - N), (0, 0)))

    grid = (B, n_q // tq, n_kv // tkv)

    # Accurate scoped-VMEM request: blocks below already include
    # double-buffering; cap at the generation-aware budget.
    blk_bytes = (2 * H * tq * D * itemsize        # q blocks
                 + 2 * H * tq * D * out_isz       # out blocks
                 + kv_blk_bytes)                  # k + v blocks
    scr_bytes = H * tq * (D + 2) * 4              # acc + m + l (f32)
    vmem_limit = int(min(budget, max(blk_bytes + scr_bytes + (2 << 20), 8 << 20)))

    kernel = _make_attend_kernel(H, tq, tkv, D, N, needs_mask, compute_dtype, exp_dtype)

    out = pl.pallas_call(
        kernel,
        out_shape=jax.ShapeDtypeStruct((B, H, n_q, D), out_dtype),
        grid_spec=pltpu.PrefetchScalarGridSpec(
            num_scalar_prefetch=0,
            grid=grid,
            in_specs=[
                pl.BlockSpec((1, H, tq, D), lambda b, qi, kv: (b, 0, qi, 0)),
                pl.BlockSpec((1, tkv, D), lambda b, qi, kv: (b, kv, 0)),
                pl.BlockSpec((1, tkv, D), lambda b, qi, kv: (b, kv, 0)),
            ],
            out_specs=pl.BlockSpec((1, H, tq, D), lambda b, qi, kv: (b, 0, qi, 0)),
            scratch_shapes=[
                pltpu.VMEM((H * tq, 1), jnp.float32),   # running max m
                pltpu.VMEM((H * tq, 1), jnp.float32),   # running denom l
                pltpu.VMEM((H * tq, D), jnp.float32),   # output accumulator
            ],
        ),
        compiler_params=pltpu.CompilerParams(
            dimension_semantics=("parallel", "parallel", "arbitrary"),
            vmem_limit_bytes=vmem_limit,
        ),
    )(q, k, v)

    if n_q != N:
        out = out[:, :, :N, :]
    return out


def attend_reference(q, k, v):
    """Pure-JAX reference matching the PyTorch module exactly (f32 math)."""
    scale = q.shape[-1] ** (-0.5)
    sim = jnp.einsum('bhid,bjd->bhij', q, k) * scale
    attn = jax.nn.softmax(sim, axis=-1)
    return jnp.einsum('bhij,bjd->bhid', attn, v)


if __name__ == "__main__":
    key = jax.random.PRNGKey(0)
    kq, kk, kv_ = jax.random.split(key, 3)

    # --- 1) Small f32 inputs, full-precision compute path.
    B, H, N, D = 2, 4, 8, 32
    q = jax.random.normal(kq, (B, H, N, D), dtype=jnp.float32)
    k = jax.random.normal(kk, (B, N, D), dtype=jnp.float32)
    v = jax.random.normal(kv_, (B, N, D), dtype=jnp.float32)

    ref = attend_reference(q, k, v)
    out = jax.block_until_ready(attend(q, k, v, compute_dtype=jnp.float32))
    assert out.shape == (B, H, N, D)
    # Tolerance allows for MXU f32 matmul precision modes; algorithmic bugs
    # would be O(0.1-1) off.
    assert jnp.allclose(out, ref, atol=1e-2, rtol=1e-2), "f32 path mismatch"

    # --- 2) Default path on f32 inputs: bf16 MXU operands + bf16 exp
    #        (documented accuracy trade-off -> looser tolerance).
    out_bf = jax.block_until_ready(attend(q, k, v))
    assert jnp.allclose(out_bf, ref, atol=5e-2, rtol=5e-2), "bf16-compute path mismatch"

    # --- 3) Multi-tile grid + online-softmax accumulation across kv steps +
    #        KV padding/masking (N=320 is not a multiple of 128) + bf16 inputs.
    B2, H2, N2, D2 = 1, 2, 320, 64
    k2q, k2k, k2v = jax.random.split(jax.random.PRNGKey(0), 3)
    q2 = jax.random.normal(k2q, (B2, H2, N2, D2), dtype=jnp.bfloat16)
    k2 = jax.random.normal(k2k, (B2, N2, D2), dtype=jnp.bfloat16)
    v2 = jax.random.normal(k2v, (B2, N2, D2), dtype=jnp.bfloat16)
    out2 = jax.block_until_ready(attend(q2, k2, v2, q_tile=128, kv_tile=128))
    ref2 = attend_reference(q2.astype(jnp.float32), k2.astype(jnp.float32),
                            v2.astype(jnp.float32))
    assert out2.shape == (B2, H2, N2, D2)
    assert jnp.allclose(out2.astype(jnp.float32), ref2, atol=5e-2, rtol=5e-2), \
        "tiled bf16 path mismatch"

    print("KERNEL_OK")
</pallas_src>

<mosaic_0001>
module attributes {stable_mosaic.version = 11 : i64} {
  func.func @kernel(%arg0: i32, %arg1: i32, %arg2: i32, %arg3: memref<1x4x8x32xf32, #tpu.memory_space<vmem>>, %arg4: memref<1x8x32xf32, #tpu.memory_space<vmem>>, %arg5: memref<1x8x32xf32, #tpu.memory_space<vmem>>, %arg6: memref<1x4x8x32xf32, #tpu.memory_space<vmem>>, %arg7: memref<32x1xf32, #tpu.memory_space<vmem>>, %arg8: memref<32x1xf32, #tpu.memory_space<vmem>>, %arg9: memref<32x32xf32, #tpu.memory_space<vmem>>) attributes {dimension_semantics = [#tpu.dimension_semantics<parallel>, #tpu.dimension_semantics<parallel>, #tpu.dimension_semantics<arbitrary>], iteration_bounds = array<i64: 2, 1, 1>, scalar_prefetch = 0 : i64, scratch_operands = 3 : i64, tpu.core_type = #tpu.core_type<tc>, window_params = [{transform_indices = @transform_0, window_bounds = array<i64: 1, 4, 8, 32>}, {transform_indices = @transform_1, window_bounds = array<i64: 1, 8, 32>}, {transform_indices = @transform_2, window_bounds = array<i64: 1, 8, 32>}, {transform_indices = @transform_3, window_bounds = array<i64: 1, 4, 8, 32>}]} {
    %c0_i32 = arith.constant 0 : i32
    %0 = arith.cmpi eq, %arg2, %c0_i32 : i32
    %1 = arith.extui %0 : i1 to i32
    %c0_i32_0 = arith.constant 0 : i32
    %2 = arith.cmpi ne, %1, %c0_i32_0 : i32
    scf.if %2 {
      %cst_28 = arith.constant -1.000000e+30 : f32
      %38 = vector.broadcast %cst_28 : f32 to vector<32x1xf32>
      %c0_29 = arith.constant 0 : index
      %c0_30 = arith.constant 0 : index
      %39 = vector.load %arg7[%c0_29, %c0_30] : memref<32x1xf32, #tpu.memory_space<vmem>>, vector<32x1xf32>
      tpu.vector_store %arg7[%c0_29, %c0_30], %38 {strides = array<i32>} : memref<32x1xf32, #tpu.memory_space<vmem>>, vector<32x1xf32>,
      %cst_31 = arith.constant 0.000000e+00 : f32
      %40 = vector.broadcast %cst_31 : f32 to vector<32x1xf32>
      %c0_32 = arith.constant 0 : index
      %c0_33 = arith.constant 0 : index
      %41 = vector.load %arg8[%c0_32, %c0_33] : memref<32x1xf32, #tpu.memory_space<vmem>>, vector<32x1xf32>
      tpu.vector_store %arg8[%c0_32, %c0_33], %40 {strides = array<i32>} : memref<32x1xf32, #tpu.memory_space<vmem>>, vector<32x1xf32>,
      %cst_34 = arith.constant 0.000000e+00 : f32
      %42 = vector.broadcast %cst_34 : f32 to vector<32x32xf32>
      %c0_35 = arith.constant 0 : index
      %c0_36 = arith.constant 0 : index
      %43 = vector.load %arg9[%c0_35, %c0_36] : memref<32x32xf32, #tpu.memory_space<vmem>>, vector<32x32xf32>
      tpu.vector_store %arg9[%c0_35, %c0_36], %42 {strides = array<i32>} : memref<32x32xf32, #tpu.memory_space<vmem>>, vector<32x32xf32>,
    } else {
    }
    %c0 = arith.constant 0 : index
    %c0_1 = arith.constant 0 : index
    %c0_2 = arith.constant 0 : index
    %c0_3 = arith.constant 0 : index
    %3 = vector.load %arg3[%c0, %c0_1, %c0_2, %c0_3] : memref<1x4x8x32xf32, #tpu.memory_space<vmem>>, vector<1x4x8x32xf32>
    %4 = vector.shape_cast %3 : vector<1x4x8x32xf32> to vector<4x8x32xf32>
    %5 = vector.shape_cast %4 : vector<4x8x32xf32> to vector<32x32xf32>
    %c0_4 = arith.constant 0 : index
    %c0_5 = arith.constant 0 : index
    %c0_6 = arith.constant 0 : index
    %6 = vector.load %arg4[%c0_4, %c0_5, %c0_6] : memref<1x8x32xf32, #tpu.memory_space<vmem>>, vector<1x8x32xf32>
    %7 = vector.shape_cast %6 : vector<1x8x32xf32> to vector<8x32xf32>
    %c0_7 = arith.constant 0 : index
    %c0_8 = arith.constant 0 : index
    %c0_9 = arith.constant 0 : index
    %8 = vector.load %arg5[%c0_7, %c0_8, %c0_9] : memref<1x8x32xf32, #tpu.memory_space<vmem>>, vector<1x8x32xf32>
    %9 = vector.shape_cast %8 : vector<1x8x32xf32> to vector<8x32xf32>
    %cst = arith.constant 0.176776692 : f32
    %10 = vector.broadcast %cst : f32 to vector<32x32xf32>
    %11 = arith.mulf %5, %10 : vector<32x32xf32>
    %cst_10 = arith.constant dense<0.000000e+00> : vector<32x8xf32>
    %12 = tpu.matmul %11, %7, %cst_10 {dimension_numbers = #tpu.dot_dimension_numbers<[1], [1], [0], [0], [0, 0, 1, 0], [], []>} : vector<32x32xf32>, vector<8x32xf32>, vector<32x8xf32> -> vector<32x8xf32>
    %c0_11 = arith.constant 0 : index
    %c0_12 = arith.constant 0 : index
    %13 = vector.load %arg7[%c0_11, %c0_12] : memref<32x1xf32, #tpu.memory_space<vmem>>, vector<32x1xf32>
    %cst_13 = arith.constant dense<0xFF800000> : vector<32xf32>
    %14 = vector.multi_reduction <maximumf>, %12, %cst_13 [1] : vector<32x8xf32> to vector<32xf32>
    %15 = vector.shape_cast %14 : vector<32xf32> to vector<32x1xf32>
    %16 = arith.maximumf %13, %15 : vector<32x1xf32>
    %17 = arith.subf %13, %16 : vector<32x1xf32>
    %18 = math.exp %17 : vector<32x1xf32>
    %19 = vector.broadcast %16 : vector<32x1xf32> to vector<32x8xf32>
    %20 = arith.subf %12, %19 : vector<32x8xf32>
    %21 = math.exp %20 : vector<32x8xf32>
    %c0_14 = arith.constant 0 : index
    %c0_15 = arith.constant 0 : index
    %22 = vector.load %arg8[%c0_14, %c0_15] : memref<32x1xf32, #tpu.memory_space<vmem>>, vector<32x1xf32>
    %23 = arith.mulf %18, %22 : vector<32x1xf32>
    %cst_16 = arith.constant dense<0.000000e+00> : vector<32xf32>
    %24 = vector.multi_reduction <add>, %21, %cst_16 [1] : vector<32x8xf32> to vector<32xf32>
    %25 = vector.shape_cast %24 : vector<32xf32> to vector<32x1xf32>
    %26 = arith.addf %23, %25 : vector<32x1xf32>
    %c0_17 = arith.constant 0 : index
    %c0_18 = arith.constant 0 : index
    %27 = vector.load %arg8[%c0_17, %c0_18] : memref<32x1xf32, #tpu.memory_space<vmem>>, vector<32x1xf32>
    tpu.vector_store %arg8[%c0_17, %c0_18], %26 {strides = array<i32>} : memref<32x1xf32, #tpu.memory_space<vmem>>, vector<32x1xf32>,
    %c0_19 = arith.constant 0 : index
    %c0_20 = arith.constant 0 : index
    %28 = vector.load %arg9[%c0_19, %c0_20] : memref<32x32xf32, #tpu.memory_space<vmem>>, vector<32x32xf32>
    %29 = vector.broadcast %18 : vector<32x1xf32> to vector<32x32xf32>
    %30 = arith.mulf %29, %28 : vector<32x32xf32>
    %cst_21 = arith.constant dense<0.000000e+00> : vector<32x32xf32>
    %31 = tpu.matmul %21, %9, %cst_21 {dimension_numbers = #tpu.dot_dimension_numbers<[1], [0], [0], [1], [0, 0, 1, 1], [], []>} : vector<32x8xf32>, vector<8x32xf32>, vector<32x32xf32> -> vector<32x32xf32>
    %32 = arith.addf %30, %31 : vector<32x32xf32>
    %c0_22 = arith.constant 0 : index
    %c0_23 = arith.constant 0 : index
    %33 = vector.load %arg9[%c0_22, %c0_23] : memref<32x32xf32, #tpu.memory_space<vmem>>, vector<32x32xf32>
    tpu.vector_store %arg9[%c0_22, %c0_23], %32 {strides = array<i32>} : memref<32x32xf32, #tpu.memory_space<vmem>>, vector<32x32xf32>,
    %c0_24 = arith.constant 0 : index
    %c0_25 = arith.constant 0 : index
    %34 = vector.load %arg7[%c0_24, %c0_25] : memref<32x1xf32, #tpu.memory_space<vmem>>, vector<32x1xf32>
    tpu.vector_store %arg7[%c0_24, %c0_25], %16 {strides = array<i32>} : memref<32x1xf32, #tpu.memory_space<vmem>>, vector<32x1xf32>,
    %c0_i32_26 = arith.constant 0 : i32
    %35 = arith.cmpi eq, %arg2, %c0_i32_26 : i32
    %36 = arith.extui %35 : i1 to i32
    %c0_i32_27 = arith.constant 0 : i32
    %37 = arith.cmpi ne, %36, %c0_i32_27 : i32
    scf.if %37 {
      %c0_28 = arith.constant 0 : index
      %c0_29 = arith.constant 0 : index
      %38 = vector.load %arg8[%c0_28, %c0_29] : memref<32x1xf32, #tpu.memory_space<vmem>>, vector<32x1xf32>
      %39 = tpu.reciprocal %38 : vector<32x1xf32> -> vector<32x1xf32>
      %c0_30 = arith.constant 0 : index
      %c0_31 = arith.constant 0 : index
      %40 = vector.load %arg9[%c0_30, %c0_31] : memref<32x32xf32, #tpu.memory_space<vmem>>, vector<32x32xf32>
      %41 = vector.broadcast %39 : vector<32x1xf32> to vector<32x32xf32>
      %42 = arith.mulf %40, %41 : vector<32x32xf32>
      %43 = vector.shape_cast %42 : vector<32x32xf32> to vector<4x8x32xf32>
      %c0_32 = arith.constant 0 : index
      %c0_33 = arith.constant 0 : index
      %c0_34 = arith.constant 0 : index
      %c0_35 = arith.constant 0 : index
      %44 = vector.load %arg6[%c0_32, %c0_33, %c0_34, %c0_35] : memref<1x4x8x32xf32, #tpu.memory_space<vmem>>, vector<1x4x8x32xf32>
      %45 = vector.shape_cast %44 : vector<1x4x8x32xf32> to vector<4x8x32xf32>
      %46 = vector.shape_cast %43 : vector<4x8x32xf32> to vector<1x4x8x32xf32>
      tpu.vector_store %arg6[%c0_32, %c0_33, %c0_34, %c0_35], %46 {strides = array<i32>} : memref<1x4x8x32xf32, #tpu.memory_space<vmem>>, vector<1x4x8x32xf32>,
    } else {
    }
    return
  }
  func.func @transform_0(%arg0: i32, %arg1: i32, %arg2: i32) -> (i32, i32, i32, i32) {
    %c0_i32 = arith.constant 0 : i32
    %c0_i32_0 = arith.constant 0 : i32
    %c0_i32_1 = arith.constant 0 : i32
    return %arg0, %c0_i32, %arg1, %c0_i32_0 : i32, i32, i32, i32
  }
  func.func @transform_1(%arg0: i32, %arg1: i32, %arg2: i32) -> (i32, i32, i32) {
    %c0_i32 = arith.constant 0 : i32
    %c0_i32_0 = arith.constant 0 : i32
    return %arg0, %arg2, %c0_i32 : i32, i32, i32
  }
  func.func @transform_2(%arg0: i32, %arg1: i32, %arg2: i32) -> (i32, i32, i32) {
    %c0_i32 = arith.constant 0 : i32
    %c0_i32_0 = arith.constant 0 : i32
    return %arg0, %arg2, %c0_i32 : i32, i32, i32
  }
  func.func @transform_3(%arg0: i32, %arg1: i32, %arg2: i32) -> (i32, i32, i32, i32) {
    %c0_i32 = arith.constant 0 : i32
    %c0_i32_0 = arith.constant 0 : i32
    %c0_i32_1 = arith.constant 0 : i32
    return %arg0, %c0_i32, %arg1, %c0_i32_0 : i32, i32, i32, i32
  }
}

</mosaic_0001>

<bundles_post_ra>
// kernel: tpu_custom_call.1
= control target key start
LH: loop header
LB: loop body
LE: loop exit
PB: predicated region body
PF: predicated region fallthrough
CT: control target
= control target key end

     0   :  { %s1526_s0 = inlined_call_operand.hbm [shape: f32[2,4,8,32], index: 0, kind: input, shape index: {}]   ;;  %s1527_s1 = inlined_call_operand.hbm [shape: f32[2,8,32], index: 1, kind: input, shape index: {}]   ;;  %s1528_s2 = inlined_call_operand.hbm [shape: f32[2,8,32], index: 2, kind: input, shape index: {}]   ;;  %s1529_s3 = inlined_call_operand.hbm [shape: f32[2,4,8,32], index: 3, kind: output, shape index: {}]  }
   0x1   :  { %1536 = sst [smem:[#allocation18_spill]] %s1526_s0 }
   0x2   :  { %1537 = sst [smem:[#allocation19_spill]] %s1527_s1 }
   0x3   :  { %8 = vsyncpa [#allocation6], 0 }
   0x4   :  { %10 = vsyncpa [#allocation6 + $0x1], 0 }
   0x5   :  { %11 = vsyncpa [#allocation9], 0 }
   0x6   :  { %13 = vsyncpa [#allocation9 + $0x1], 0 }
   0x7   :  { %14 = vsyncpa [#allocation7], 0 }
   0x8   :  { %16 = vsyncpa [#allocation7 + $0x1], 0  ;;  %s1213_s12 = smov 0   ;;  %s1215_s13 = smov 0  }
   0x9   :  { %s1217_s14 = smov 0   ;;  %s1219_s15 = smov 0  }
   0xa   :  { %s1221_s16 = smov 0   ;;  %s1223_s17 = smov 0  }
   0xb LB: > { %1538 = sst [smem:[#allocation15_spill]] %s1176_s16  ;;  %s1244_s18 = sadd.s32 4294967295, %s1180_s17   ;;  %s1180_s17 = sphi %s1223_s17, %s22_s17   ;;  %s1176_s16 = sphi %s1221_s16, %s1559_s16   ;;  %s1172_s15 = sphi %s1219_s15, %s1558_s15   ;;  %s1168_s14 = sphi %s1217_s14, %s1562_s14   ;;  %s1164_s13 = sphi %s1215_s13, %s1561_s13   ;;  %s1160_s12 = sphi %s1213_s12, %s1560_s12  }
   0xc   : > { %s842_s19 = sadd.s32 4294967294, %s1180_s17   ;;  %s41_s20 = sadd.s32 1, %s1176_s16 }
   0xd   : > { %s50_s21 = sadd.s32 1, %s1168_s14  ;;  %p43_p0 = scmp.ge.s32.totalorder %s41_s20, 2 }
   0xe   : > { %p57_p1 = scmp.ne.s32.totalorder %s1168_s14, %s1164_s13  ;;  %p58_p2 = scmp.eq.s32.totalorder %s1180_s17, 0 }
   0xf   : > { %p63_p3 = scmp.ne.s32.totalorder %s1164_s13, %s1160_s12  ;;  %s1564_s20 = smov (%p43_p0, %s41_s20), 0 }
  0x10   : > { %1539 = sst [smem:[#allocation16_spill]] %s1564_s20  ;;  %p1256_p4 = por %p58_p2, %p57_p1 }
  0x11   : > { %p64_p5 = scmp.eq.s32.totalorder %s1244_s18, 0  ;;  %s45_s23 = ssub.s32 %s1176_s16, %s1564_s20 }
  0x12   : > { %p145_p6 = scmp.eq.s32.totalorder %s1244_s18, 1  ;;  %p48_p7 = scmp.eq.s32.totalorder %s45_s23, 0 }
  0x13   : > { %p1264_p8 = por %p64_p5, %p63_p3  ;;  %p151_p10 = scmp.eq.s32.totalorder %s842_s19, 1 }
  0x14   : > { %p1268_p9 = por %p145_p6, %p57_p1  ;;  %p921_p13 = scmp.lt.s32.totalorder %s1180_s17, 2 }
  0x15   : > { %s1541_s24 = scalar_select %p1264_p8, 1, 0 }
  0x16   : > { %s1542_s25 = scalar_select %p1268_p9, 1, 0 }
  0x17   : > { %s1273_s26 = scalar_select %p48_p7, %s1168_s14, %s50_s21  }
  0x18   : > { %p1275_p11 = por %p151_p10, %p63_p3  ;;  %s1282_s28 = sand.u32 1, %s1168_s14  }
  0x19   : > { %1543 = sst [smem:[#allocation17_spill]] %s1273_s26  ;;  %s193_s29 = sand.u32 1, %s1180_s17  }
  0x1a   : > { %s1544_s27 = scalar_select %p1275_p11, 1, 0 }
  0x1b   : > { %s1530_s30 = sshll.u32 %s1282_s28, 3  ;;  %p1288_p0 = pnand %p921_p13, %p1256_p4 }
  0x1c   : > { %s849_s5 = sshll.u32 %s1176_s16, 7  ;;  %s1546_s1 = sld [smem:[#allocation19_spill]] }
  0x1d   : > { %s1545_s4 = scalar_select %p1288_p0, 1, 0 }
  0x1e   : > { %s197_s9 = scalar_lea.vmem [#allocation8], %s1530_s30  ;;  %s1305_s21 = scalar_lea.hbm %s1528_s2, %s849_s5 }
  0x1f   : > { %s205_s10 = sshll.u32 %s197_s9, 4  ;;  %s1307_s22 = scalar_lea.sflag [#allocation9], %s193_s29  ;;  %s1300_s10 = int_to_ptr.vmem [resolvable:$true] %s205_s10 }
  0x20   : > { %p1313_p2 = pneg %p1288_p0 }
  0x22   : > { %s1296_s8 = scalar_lea.hbm %s1546_s1, %s849_s5  ;;  %s1009_s30 = scalar_lea.hbm %s1546_s1, 256 }
  0x23   : > { %s1004_s23 = scalar_lea.hbm %s1296_s8, 128  ;;  %p1010_p5 = scmp.lt.u32.totalorder %s1296_s8, %s1546_s1 }
  0x24   : > { %p1005_p1 = scmp.ne.s32.totalorder %s1296_s8, %s1004_s23  ;;  %p1011_p6 = scmp.lt.u32.totalorder %s1009_s30, %s1004_s23 }
  0x25   : > { %p1013_p10 = scmp.lt.u32.totalorder %s1004_s23, %s1296_s8 }
  0x26   : > { %p1007_p3 = pnand %p1313_p2, %p1005_p1  ;;  %p1012_p7 = por %p1011_p6, %p1010_p5 }
  0x28   : > { %p1008_p4 = pneg %p1007_p3  ;;  %p1014_p13 = por %p1013_p10, %p1012_p7 }
  0x2a   : > { %p1015_p12 = pnand %p1014_p13, %p1008_p4 }
  0x2c   : > { %1018 = shalt.err (!%p1015_p12)
}
  0x2d   : > { %s1019_s29 = scalar_lea.vmem %s1300_s10, 128  ;;  %s1182_s19 = smov [#allocation8]  }
  0x2e   : > { %p1020_p1 = scmp.ne.s32.totalorder %s1300_s10, %s1019_s29  ;;  %s1024_s7 = sshll.u32 %s1182_s19, 4  ;;  %s1025_s7 = int_to_ptr.vmem [resolvable:$false] %s1024_s7 }
  0x2f   : > { %s1026_s9 = scalar_lea.vmem %s1025_s7, 256  ;;  %p1027_p9 = scmp.lt.s32.totalorder %s1300_s10, %s1025_s7 }
  0x30   : > { %p1022_p3 = pnand %p1020_p1, %p1313_p2  ;;  %p1028_p8 = scmp.lt.s32.totalorder %s1026_s9, %s1019_s29 }
  0x32   : > { %p1023_p11 = pneg %p1022_p3  ;;  %p1029_p5 = por %p1028_p8, %p1027_p9 }
  0x34   : > { %p1030_p6 = pnand %p1029_p5, %p1023_p11 }
  0x36   : > { %1033 = shalt.err (!%p1030_p6)
}
  0x37   : > { %913 = dma.hbm_to_vmem [thread:$0]  (!%p1288_p0), %s1296_s8, 128, %s1300_s10, %s1307_s22  }
  0x38   : > { %p852_p12 = scmp.ge.s32.totalorder %s1180_s17, 1  ;;  %p229_p4 = scmp.lt.s32.totalorder %s1180_s17, 3 }
  0x39   : > { %s845_s23 = sshll.u32 %s1282_s28, 5  ;;  %s871_s11 = sshll.u32 %s1176_s16, 9 }
  0x3a   : > { %p1339_p7 = pnand %p852_p12, %p229_p4  ;;  %s1549_s0 = sld [smem:[#allocation18_spill]] }
  0x3b   : > { %s175_s7 = scalar_lea.vmem [#allocation5], %s845_s23  ;;  %s172_s8 = scalar_lea.sflag [#allocation6], %s1282_s28 }
  0x3c   : > { %s1548_s30 = scalar_select %p1339_p7, 1, 0 }
  0x3d   : > { %s183_s9 = sshll.u32 %s175_s7, 4  ;;  %s1350_s9 = int_to_ptr.vmem [resolvable:$true] %s183_s9 }
  0x40   : > { %s1348_s19 = scalar_lea.hbm %s1549_s0, %s871_s11  ;;  %s1039_s5 = scalar_lea.hbm %s1549_s0, 1024 }
  0x41   : > { %s1034_s10 = scalar_lea.hbm %s1348_s19, 512  ;;  %p1040_p10 = scmp.lt.u32.totalorder %s1348_s19, %s1549_s0 }
  0x42   : > { %p1035_p8 = scmp.ne.s32.totalorder %s1348_s19, %s1034_s10  ;;  %p1041_p13 = scmp.lt.u32.totalorder %s1039_s5, %s1034_s10 }
  0x43   : > { %p1043_p3 = scmp.lt.u32.totalorder %s1034_s10, %s1348_s19 }
  0x44   : > { %p1037_p9 = pnand %p1035_p8, %p1313_p2  ;;  %p1042_p1 = por %p1041_p13, %p1040_p10 }
  0x46   : > { %p1038_p11 = pneg %p1037_p9  ;;  %p1044_p5 = por %p1043_p3, %p1042_p1 }
  0x48   : > { %p1045_p6 = pnand %p1044_p5, %p1038_p11 }
  0x4a   : > { %1048 = shalt.err (!%p1045_p6)
}
  0x4b   : > { %s1049_s23 = scalar_lea.vmem %s1350_s9, 512  ;;  %s1183_s1 = smov [#allocation5]  }
  0x4c   : > { %p1050_p12 = scmp.ne.s32.totalorder %s1350_s9, %s1049_s23  ;;  %s1054_s20 = sshll.u32 %s1183_s1, 4  ;;  %s1055_s20 = int_to_ptr.vmem [resolvable:$false] %s1054_s20 }
  0x4d   : > { %s1056_s7 = scalar_lea.vmem %s1055_s20, 1024  ;;  %p1057_p9 = scmp.lt.s32.totalorder %s1350_s9, %s1055_s20 }
  0x4e   : > { %p1052_p4 = pnand %p1050_p12, %p1313_p2  ;;  %p1058_p7 = scmp.lt.s32.totalorder %s1056_s7, %s1049_s23 }
  0x50   : > { %p1053_p8 = pneg %p1052_p4  ;;  %p1059_p10 = por %p1058_p7, %p1057_p9 }
  0x52   : > { %p1060_p13 = pnand %p1059_p10, %p1053_p8 }
  0x54   : > { %1063 = shalt.err (!%p1060_p13)
}
  0x55   : > { %s1184_s10 = smov 128   ;;  %s1185_s5 = smov 8  }
  0x56   : > { %910 = dma.hbm_to_vmem [thread:$0]  (!%p1288_p0), %s1348_s19, 512, %s1350_s9, %s172_s8, %s1184_s10, %s1184_s10, %s1185_s5  }
  0x57   : > { %s1550_s11 = sshll.u32 %s1282_s28, 3  ;;  %s1064_s1 = scalar_lea.hbm %s1305_s21, 128 }
  0x58   : > { %s216_s29 = scalar_lea.vmem [#allocation10], %s1550_s11  ;;  %p1065_p7 = scmp.ne.s32.totalorder %s1305_s21, %s1064_s1 }
  0x59   : > { %s224_s23 = sshll.u32 %s216_s29, 4  ;;  %s1069_s0 = scalar_lea.hbm %s1528_s2, 256  ;;  %s225_s23 = int_to_ptr.vmem [resolvable:$true] %s224_s23 }
  0x5a   : > { %p1067_p11 = pnand %p1065_p7, %p1313_p2  ;;  %p1070_p3 = scmp.lt.u32.totalorder %s1305_s21, %s1528_s2 }
  0x5b   : > { %p1071_p5 = scmp.lt.u32.totalorder %s1069_s0, %s1064_s1  ;;  %p1073_p12 = scmp.lt.u32.totalorder %s1064_s1, %s1305_s21 }
  0x5c   : > { %p1068_p1 = pneg %p1067_p11 }
  0x5d   : > { %p1072_p6 = por %p1071_p5, %p1070_p3 }
  0x5f   : > { %p1074_p4 = por %p1073_p12, %p1072_p6 }
  0x61   : > { %p1075_p8 = pnand %p1074_p4, %p1068_p1 }
  0x63   : > { %1078 = shalt.err (!%p1075_p8)
}
  0x64   : > { %s1079_s28 = scalar_lea.vmem %s225_s23, 128  ;;  %s1186_s19 = smov [#allocation10]  }
  0x65   : > { %p1080_p9 = scmp.ne.s32.totalorder %s225_s23, %s1079_s28  ;;  %s1084_s9 = sshll.u32 %s1186_s19, 4  ;;  %s1085_s9 = int_to_ptr.vmem [resolvable:$false] %s1084_s9 }
  0x66   : > { %s1086_s8 = scalar_lea.vmem %s1085_s9, 256  ;;  %p1087_p7 = scmp.lt.s32.totalorder %s225_s23, %s1085_s9 }
  0x67   : > { %p1082_p10 = pnand %p1080_p9, %p1313_p2  ;;  %p1088_p11 = scmp.lt.s32.totalorder %s1086_s8, %s1079_s28 }
  0x69   : > { %p1083_p13 = pneg %p1082_p10  ;;  %p1089_p0 = por %p1088_p11, %p1087_p7 }
  0x6b   : > { %p1090_p3 = pnand %p1089_p0, %p1083_p13 }
  0x6d   : > { %1093 = shalt.err (!%p1090_p3)
}
  0x6e   : > { %p1551_p5 = scmp.ne.s32.totalorder %s1545_s4, 0  ;;  %p1552_p1 = scmp.ne.s32.totalorder %s1548_s30, 0 }
  0x6f   : > { %s1399_s0 = sand.u32 (!%p1552_p1), 1, %s1164_s13   ;;  %p1553_p0 = scmp.ne.s32.totalorder (!%p1552_p1), %s1541_s24, 0 }
  0x70   : > { %916 = dma.hbm_to_vmem [thread:$0]  (!%p1551_p5), %s1305_s21, 128, %s225_s23, %s1307_s22  }
  0x71   : > { %233 = sbr.rel (%p1552_p1) target bundleno = 951 (0x3b7), region = 32  ;;  %s853_s16 = sshll.u32 (!%p1552_p1), %s1399_s0, 5 }
  0x72   : > { %s236_s26 = scalar_lea.sflag (!%p1552_p1), [#allocation6], %s1399_s0  ;;  %s239_s6 = scalar_lea.vmem (!%p1552_p1), [#allocation5], %s853_s16 }
  0x78   : > { %1147 = dma.done.wait (%p1553_p0), %s236_s26, 512  }
  0x79   : > { %1149 = vsyncadd (%p1553_p0), %s236_s26, 4294966784  ;;  %s244_s4 = sand.u32 1, %s1244_s18   ;;  %s854_s21 = sshll.u32 %s1399_s0, 3 }
  0x7a   : > { %s245_s22 = scalar_lea.sflag [#allocation9], %s244_s4  ;;  %s248_s30 = scalar_lea.vmem [#allocation8], %s854_s21 }
  0x7b   : > { %1151 = dma.done.wait (%p1553_p0), %s245_s22, 256  }
  0x7c   : > { %1153 = vsyncadd (%p1553_p0), %s245_s22, 4294967040  ;;  %vm303_vm0 = vcmask 261120   ;;  %v312_v0 = vld [vmem:[%s248_s30] sm:$0xff]  ;;  %v310_v5 = vld [vmem:[%s239_s6 + $0x10] sm:$0xff]  ;;  %vm294_vm1 = vcmask 7168   ;;  %vm423_vm2 = vcmask 64512  }
  0x7d   : > { %v308_v1 = vld [vmem:[%s239_s6] sm:$0xff]  ;;  %v309_v2 = vld [vmem:[%s239_s6 + $0x8] sm:$0xff]  ;;  %883 = vmatprep.subr.msk.mxu0 %vm303_vm0, %v312_v0  ;;  %v316_v6 = vmul.f32 0.17677669, %v310_v5  ;;  %v311_v7 = vld [vmem:[%s239_s6 + $0x18] sm:$0xff]  ;;  %v1188_v18 = vmov 0  }
  0x7e   : > { %v314_v3 = vmul.f32 0.17677669, %v308_v1  ;;  %v315_v4 = vmul.f32 0.17677669, %v309_v2  ;;  %884 = vmatpush3.xpose.msk.msra.mxu0 %vm303_vm0, %v312_v0  ;;  %v317_v8 = vmul.f32 0.17677669, %v311_v7  ;;  %978 = vset.pattern.permute.xlu0 %v1188_v18 }
  0x7f   : > { %v1187_v9 = vmov -1e+30   ;;  %979 = vset.pattern.permute.xlu1 %v1188_v18  ;;  %v1189_v19 = vmov 0.0   ;;  %s257_s18 = scalar_lea.vmem [#allocation10], %s854_s21  ;;  %s289_s24 = scalar_lea.vmem [#allocation11], %s853_s16 }
  0x80   : > { %885 = vmatprep.mubr.msk.f32.mxu0 %vm303_vm0, %v314_v3  ;;  %295 = vst.msk [vmem:[#allocation2] sm:$0xff] %vm294_vm1, %v1187_v9  ;;  %296 = vst.msk [vmem:[#allocation2 + $0x8] sm:$0xff] %vm294_vm1, %v1187_v9  ;;  %v313_v36 = vld [vmem:[%s257_s18] sm:$0xff]  ;;  %s708_s10 = sshll.u32 %s289_s24, 4  ;;  %s872_s5 = sshll.u32 %s1172_s15, 9  ;;  %s1470_s10 = int_to_ptr.vmem [resolvable:$true] %s708_s10 }
  0x81   : > { %886 = vmatmul.mubr.msk.f32.vlgmr.msra.gmra.mrb[0].mxu0 %vm303_vm0, %v315_v4  ;;  %297 = vst.msk [vmem:[#allocation2 + $0x10] sm:$0xff] %vm294_vm1, %v1187_v9  ;;  %298 = vst.msk [vmem:[#allocation2 + $0x18] sm:$0xff] %vm294_vm1, %v1187_v9  ;;  %891 = vmatprep.subr.mxu1 %v313_v36  ;;  %s1476_s23 = scalar_lea.hbm %s1529_s3, %s872_s5  ;;  %s694_s1 = scalar_lea.sflag [#allocation7], %s1399_s0 }
  0x82   : > { %888 = vmatprep.mubr.msk.f32.mxu0 %vm303_vm0, %v316_v6  ;;  %299 = vst.msk [vmem:[#allocation3] sm:$0xff] %vm294_vm1, %v1189_v19  ;;  %300 = vst.msk [vmem:[#allocation3 + $0x8] sm:$0xff] %vm294_vm1, %v1189_v19  ;;  %892 = vmatpush3.msra.mxu1 %v313_v36  ;;  %s1094_s20 = scalar_lea.vmem %s1470_s10, 512  ;;  %p1554_p6 = scmp.ne.s32.totalorder %s1542_s25, 0 }
  0x83   : > { %301 = vst.msk [vmem:[#allocation3 + $0x10] sm:$0xff] %vm294_vm1, %v1189_v19  ;;  %302 = vst.msk [vmem:[#allocation3 + $0x18] sm:$0xff] %vm294_vm1, %v1189_v19  ;;  %p1095_p2 = scmp.ne.s32.totalorder %s1470_s10, %s1094_s20  ;;  %s1190_s15 = smov [#allocation11]  }
  0x84   : > { %304 = vst.msk [vmem:[#allocation4] sm:$0xff] %vm303_vm0, %v1189_v19  ;;  %305 = vst.msk [vmem:[#allocation4 + $0x8] sm:$0xff] %vm303_vm0, %v1189_v19  ;;  %s1098_s7 = sshll.u32 %s1190_s15, 4  ;;  %s1099_s7 = int_to_ptr.vmem [resolvable:$false] %s1098_s7 }
  0x85   : > { %889 = vmatmul.mubr.msk.f32.gmra.mrb[2].mxu0 %vm303_vm0, %v317_v8  ;;  %306 = vst.msk [vmem:[#allocation4 + $0x10] sm:$0xff] %vm303_vm0, %v1189_v19  ;;  %307 = vst.msk [vmem:[#allocation4 + $0x18] sm:$0xff] %vm303_vm0, %v1189_v19  ;;  %p1096_p12 = pnand %p1095_p2, %p1554_p6  ;;  %s1100_s28 = scalar_lea.vmem %s1099_s7, 1024 }
  0x86   : > { %p1101_p8 = scmp.lt.s32.totalorder %s1470_s10, %s1099_s7  ;;  %p1102_p9 = scmp.lt.s32.totalorder %s1100_s28, %s1094_s20 }
  0x87   : > { %v419_v20 = vld [vmem:[#allocation2] sm:$0xff]  ;;  %v420_v23 = vld [vmem:[#allocation2 + $0x8] sm:$0xff]  ;;  %p1097_p4 = pneg %p1096_p12 }
  0x88   : > { %v421_v24 = vld [vmem:[#allocation2 + $0x10] sm:$0xff]  ;;  %v422_v30 = vld [vmem:[#allocation2 + $0x18] sm:$0xff]  ;;  %p1103_p10 = por %p1102_p9, %p1101_p8 }
  0x89   : > { %v484_v1 = vld [vmem:[#allocation3] sm:$0xff]  ;;  %v485_v4 = vld [vmem:[#allocation3 + $0x8] sm:$0xff] }
  0x8a   : > { %v486_v8 = vld [vmem:[#allocation3 + $0x10] sm:$0xff]  ;;  %p1104_p13 = pnand %p1103_p10, %p1097_p4 }
  0x8c   : > { %v516_v36 = vld [vmem:[#allocation4 + $0x18] sm:$0xff] }
 0x154   : > { %v887_v10 = vpop.f32.mrb[0].mxu0 }
 0x155   : > { %v400_v11 = vpop.f32.mrb[1].mxu0  ;;  %v427_v15 = vsel %vm423_vm2, %v887_v10, -inf }
 0x156   : > { %v424_v12 = vsel %vm423_vm2, %v400_v11, -inf }
 0x157   : > { %425 = vmax.xlane.f32.xlu0 %v424_v12  ;;  %v487_v12 = vld [vmem:[#allocation3 + $0x18] sm:$0xff] }
 0x158   : > { %v1428_v13 = vpop.f32.mrb[2].mxu0 }
 0x159   : > { %v410_v14 = vpop.f32.mrb[3].mxu0  ;;  %v433_v17 = vsel %vm423_vm2, %v1428_v13, -inf }
 0x15a   : > { %v430_v16 = vsel %vm423_vm2, %v410_v14, -inf }
 0x15b   : > { %428 = vmax.xlane.f32.xlu0 %v427_v15  ;;  %431 = vmax.xlane.f32.xlu1 %v430_v16 }
 0x15f   : > { %434 = vmax.xlane.f32.xlu1 %v433_v17 }
 0x1e4   : > { %v426_v21 = vpop.xlane.xlu0 %425 }
 0x1e5   : > { %v436_v22 = vmax.f32 %v419_v20, %v426_v21 }
 0x1e7   : > { %v440_v25 = vsub.f32 %v419_v20, %v436_v22  ;;  %646 = vst.msk [vmem:[#allocation2] sm:$0xff] %vm294_vm1, %v436_v22  ;;  %454 = vperm.xlu0 %978, %v436_v22  }
 0x1e8   : > { %v429_v26 = vpop.xlane.xlu0 %428  ;;  %v432_v27 = vpop.xlane.xlu1 %431 }
 0x1e9   : > { %v437_v28 = vmax.f32 %v420_v23, %v429_v26  ;;  %v438_v29 = vmax.f32 %v421_v24, %v432_v27  ;;  %v444_v58 = vmul.f32 1.442695, %v440_v25  ;;  %v514_v26 = vld [vmem:[#allocation4 + $0x8] sm:$0xff] }
 0x1eb   : > { %v441_v31 = vsub.f32 %v420_v23, %v437_v28  ;;  %647 = vst.msk [vmem:[#allocation2 + $0x8] sm:$0xff] %vm294_vm1, %v437_v28  ;;  %v442_v32 = vsub.f32 %v421_v24, %v438_v29  ;;  %648 = vst.msk [vmem:[#allocation2 + $0x10] sm:$0xff] %vm294_vm1, %v438_v29  ;;  %459 = vperm.xlu1 %979, %v437_v28   ;;  %v513_v28 = vld [vmem:[#allocation4] sm:$0xff] }
 0x1ec   : > { %v435_v33 = vpop.xlane.xlu1 %434 }
 0x1ed   : > { %v439_v34 = vmax.f32 %v422_v30, %v435_v33  ;;  %v446_v56 = vmul.f32 1.442695, %v441_v31  ;;  %v448_v59 = vmul.f32 1.442695, %v442_v32 }
 0x1ef   : > { %v443_v35 = vsub.f32 %v422_v30, %v439_v34  ;;  %649 = vst.msk [vmem:[#allocation2 + $0x18] sm:$0xff] %vm294_vm1, %v439_v34  ;;  %464 = vperm.xlu1 %979, %v438_v29  }
 0x1f1   : > { %v450_v60 = vmul.f32 1.442695, %v443_v35 }
 0x1f3   : > { %469 = vperm.xlu1 %979, %v439_v34  }
 0x266   : > { %v455_v37 = vpop.permute.xlu0 %454 }
 0x267   : > { %v472_v38 = vsub.f32 %v400_v11, %v455_v37 }
 0x269   : > { %v476_v39 = vmul.f32 1.442695, %v472_v38  ;;  %v515_v38 = vld [vmem:[#allocation4 + $0x10] sm:$0xff] }
 0x26a   : > { %v460_v40 = vpop.permute.xlu1 %459 }
 0x26b   : > { %980 = vpow2.f32 %v476_v39  ;;  %v473_v41 = vsub.f32 %v887_v10, %v460_v40 }
 0x26d   : > { %v478_v42 = vmul.f32 1.442695, %v473_v41 }
 0x26e   : > { %v465_v43 = vpop.permute.xlu1 %464 }
 0x26f   : > { %982 = vpow2.f32 %v478_v42  ;;  %v474_v44 = vsub.f32 %v410_v14, %v465_v43 }
 0x271   : > { %v480_v45 = vmul.f32 1.442695, %v474_v44 }
 0x272   : > { %v470_v46 = vpop.permute.xlu1 %469 }
 0x273   : > { %984 = vpow2.f32 %v480_v45  ;;  %v475_v47 = vsub.f32 %v1428_v13, %v470_v46 }
 0x275   : > { %v981_v48 = vpop.eup %980  ;;  %v482_v49 = vmul.f32 1.442695, %v475_v47 }
 0x276   : > { %893 = vmatprep.mubr.msk.f32.mxu1 %vm423_vm2, %v981_v48  ;;  %v492_v50 = vsel %vm423_vm2, %v981_v48, 0.0 }
 0x277   : > { %986 = vpow2.f32 %v482_v49  ;;  %493 = vadd.xlane.f32.xlu1 %v492_v50 }
 0x278   : > { %988 = vpow2.f32 %v446_v56 }
 0x279   : > { %v983_v51 = vpop.eup %982  ;;  %990 = vpow2.f32 %v444_v58 }
 0x27a   : > { %894 = vmatmul.mubr.msk.f32.vlgmr.msra.gmra.mrb[0].mxu1 %vm423_vm2, %v983_v51  ;;  %v495_v52 = vsel %vm423_vm2, %v983_v51, 0.0  ;;  %992 = vpow2.f32 %v448_v59 }
 0x27b   : > { %496 = vadd.xlane.f32.xlu0 %v495_v52  ;;  %994 = vpow2.f32 %v450_v60 }
 0x27d   : > { %v985_v53 = vpop.eup %984 }
 0x27e   : > { %896 = vmatprep.mubr.msk.f32.mxu1 %vm423_vm2, %v985_v53  ;;  %v498_v54 = vsel %vm423_vm2, %v985_v53, 0.0 }
 0x27f   : > { %499 = vadd.xlane.f32.xlu1 %v498_v54 }
 0x281   : > { %v987_v55 = vpop.eup %986 }
 0x282   : > { %897 = vmatmul.mubr.msk.f32.gmra.mrb[2].mxu1 %vm423_vm2, %v987_v55  ;;  %v501_v57 = vsel %vm423_vm2, %v987_v55, 0.0  ;;  %v989_v61 = vpop.eup %988 }
 0x283   : > { %502 = vadd.xlane.f32.xlu1 %v501_v57  ;;  %v991_v62 = vpop.eup %990  ;;  %v489_v6 = vmul.f32 %v989_v61, %v485_v4 }
 0x284   : > { %v993_v63 = vpop.eup %992  ;;  %v488_v2 = vmul.f32 %v991_v62, %v484_v1 }
 0x285   : > { %v995_v0 = vpop.eup %994  ;;  %v490_v10 = vmul.f32 %v993_v63, %v486_v8 }
 0x286   : > { %v491_v15 = vmul.f32 %v995_v0, %v487_v12 }
 0x291   : > { %524 = vperm.xlu0 %978, %v989_v61  }
 0x294   : > { %519 = vperm.xlu1 %979, %v991_v62  }
 0x298   : > { %529 = vperm.xlu1 %979, %v993_v63  }
 0x29c   : > { %534 = vperm.xlu1 %979, %v995_v0  }
 0x304   : > { %v494_v3 = vpop.xlane.xlu1 %493 }
 0x305   : > { %v504_v5 = vadd.f32 %v494_v3, %v488_v2 }
 0x307   : > { %509 = vst.msk [vmem:[#allocation3] sm:$0xff] %vm294_vm1, %v504_v5 }
 0x308   : > { %v497_v7 = vpop.xlane.xlu0 %496 }
 0x309   : > { %v505_v9 = vadd.f32 %v497_v7, %v489_v6 }
 0x30b   : > { %510 = vst.msk [vmem:[#allocation3 + $0x8] sm:$0xff] %vm294_vm1, %v505_v9 }
 0x30c   : > { %v500_v11 = vpop.xlane.xlu1 %499 }
 0x30d   : > { %v506_v13 = vadd.f32 %v500_v11, %v490_v10 }
 0x30e   : > { %v653_v14 = vld [vmem:[#allocation3] sm:$0xff] }
 0x30f   : > { %511 = vst.msk [vmem:[#allocation3 + $0x10] sm:$0xff] %vm294_vm1, %v506_v13  ;;  %996 = vrcp.f32 %v653_v14 }
 0x310   : > { %v503_v16 = vpop.xlane.xlu1 %502  ;;  %v525_v27 = vpop.permute.xlu0 %524 }
 0x311   : > { %v507_v17 = vadd.f32 %v503_v16, %v491_v15  ;;  %v538_v30 = vmul.f32 %v525_v27, %v514_v26 }
 0x312   : > { %v654_v18 = vld [vmem:[#allocation3 + $0x8] sm:$0xff] }
 0x313   : > { %512 = vst.msk [vmem:[#allocation3 + $0x18] sm:$0xff] %vm294_vm1, %v507_v17  ;;  %998 = vrcp.f32 %v654_v18 }
 0x314   : > { %v520_v25 = vpop.permute.xlu1 %519 }
 0x315   : > { %v537_v31 = vmul.f32 %v520_v25, %v513_v28 }
 0x316   : > { %v655_v19 = vld [vmem:[#allocation3 + $0x10] sm:$0xff] }
 0x317   : > { %1000 = vrcp.f32 %v655_v19 }
 0x318   : > { %v530_v29 = vpop.permute.xlu1 %529 }
 0x319   : > { %v997_v20 = vpop.eup %996  ;;  %v539_v40 = vmul.f32 %v530_v29, %v515_v38 }
 0x31a   : > { %667 = vperm.xlu1 %979, %v997_v20   ;;  %v656_v21 = vld [vmem:[#allocation3 + $0x18] sm:$0xff] }
 0x31b   : > { %1002 = vrcp.f32 %v656_v21 }
 0x31c   : > { %v535_v37 = vpop.permute.xlu1 %534 }
 0x31d   : > { %v999_v22 = vpop.eup %998  ;;  %v540_v39 = vmul.f32 %v535_v37, %v516_v36 }
 0x31e   : > { %672 = vperm.xlu0 %978, %v999_v22  }
 0x321   : > { %v1001_v23 = vpop.eup %1000 }
 0x322   : > { %677 = vperm.xlu1 %979, %v1001_v23  }
 0x325   : > { %v1003_v24 = vpop.eup %1002 }
 0x326   : > { %682 = vperm.xlu0 %978, %v1003_v24  }
 0x34d   : > { %v895_v32 = vpop.f32.mrb[0].mxu1 }
 0x34e   : > { %v639_v33 = vadd.f32 %v895_v32, %v538_v30  ;;  %v619_v34 = vpop.f32.mrb[1].mxu1 }
 0x34f   : > { %v638_v35 = vadd.f32 %v619_v34, %v537_v31 }
 0x350   : > { %643 = vst.msk [vmem:[#allocation4 + $0x8] sm:$0xff] %vm303_vm0, %v639_v33 }
 0x351   : > { %642 = vst.msk [vmem:[#allocation4] sm:$0xff] %vm303_vm0, %v638_v35 }
 0x355   : > { %v898_v41 = vpop.f32.mrb[2].mxu1 }
 0x356   : > { %v641_v42 = vadd.f32 %v898_v41, %v540_v39  ;;  %v629_v43 = vpop.f32.mrb[3].mxu1 }
 0x357   : > { %v640_v44 = vadd.f32 %v629_v43, %v539_v40  ;;  %v662_v48 = vld [vmem:[#allocation4 + $0x8] sm:$0xff] }
 0x358   : > { %645 = vst.msk [vmem:[#allocation4 + $0x18] sm:$0xff] %vm303_vm0, %v641_v42  ;;  %v661_v45 = vld [vmem:[#allocation4] sm:$0xff] }
 0x359   : > { %644 = vst.msk [vmem:[#allocation4 + $0x10] sm:$0xff] %vm303_vm0, %v640_v44 }
 0x35f   : > { %v664_v55 = vld [vmem:[#allocation4 + $0x18] sm:$0xff] }
 0x360   : > { %v663_v51 = vld [vmem:[#allocation4 + $0x10] sm:$0xff] }
 0x399   : > { %v668_v46 = vpop.permute.xlu1 %667 }
 0x39a   : > { %v685_v47 = vmul.f32 %v668_v46, %v661_v45 }
 0x39c   : > { %689 = vst.msk [vmem:[%s289_s24] sm:$0xff] %vm303_vm0, %v685_v47 }
 0x39d   : > { %v673_v49 = vpop.permute.xlu0 %672 }
 0x39e   : > { %v686_v50 = vmul.f32 %v673_v49, %v662_v48 }
 0x3a0   : > { %690 = vst.msk [vmem:[%s289_s24 + $0x8] sm:$0xff] %vm303_vm0, %v686_v50 }
 0x3a1   : > { %v678_v52 = vpop.permute.xlu1 %677 }
 0x3a2   : > { %v687_v53 = vmul.f32 %v678_v52, %v663_v51 }
 0x3a4   : > { %691 = vst.msk [vmem:[%s289_s24 + $0x10] sm:$0xff] %vm303_vm0, %v687_v53 }
 0x3a5   : > { %v683_v54 = vpop.permute.xlu0 %682 }
 0x3a6   : > { %v688_v56 = vmul.f32 %v683_v54, %v664_v55 }
 0x3a8   : > { %692 = vst.msk [vmem:[%s289_s24 + $0x18] sm:$0xff] %vm303_vm0, %v688_v56 }
 0x3a9   : > { %1107 = shalt.err (!%p1104_p13)
}
 0x3aa   : > { %s1108_s19 = scalar_lea.hbm %s1476_s23, 512  ;;  %s1112_s16 = scalar_lea.hbm %s1529_s3, 1024 }
 0x3ab   : > { %p1109_p7 = scmp.ne.s32.totalorder %s1476_s23, %s1108_s19  ;;  %p1113_p5 = scmp.lt.u32.totalorder %s1476_s23, %s1529_s3 }
 0x3ac   : > { %p1114_p1 = scmp.lt.u32.totalorder %s1112_s16, %s1108_s19  ;;  %p1116_p2 = scmp.lt.u32.totalorder %s1108_s19, %s1476_s23 }
 0x3ad   : > { %p1110_p11 = pnand %p1109_p7, %p1554_p6 }
 0x3ae   : > { %p1115_p0 = por %p1114_p1, %p1113_p5 }
 0x3af   : > { %p1111_p3 = pneg %p1110_p11 }
 0x3b0   : > { %p1117_p12 = por %p1116_p2, %p1115_p0 }
 0x3b2   : > { %p1118_p4 = pnand %p1117_p12, %p1111_p3 }
 0x3b4   : > { %1121 = shalt.err (!%p1118_p4)
}
 0x3b5   : > { %s1191_s4 = smov 128   ;;  %s1192_s21 = smov 8  }
 0x3b6   : > { %905 = dma.vmem_to_hbm [thread:$0]  (%p1554_p6), %s1470_s10, 512, %s1476_s23, %s694_s1, %s1191_s4, %s1191_s4, %s1192_s21  }
 0x3b7 PF: > { %s723_s22 = sand.u32 1, %s1160_s12   ;;  %p1555_p8 = scmp.ne.s32.totalorder %s1544_s27, 0 }
 0x3b8   : > { %p1556_p9 = scmp.ge.s32.totalorder %s1180_s17, 2  ;;  %s724_s30 = scalar_lea.sflag [#allocation7], %s723_s22 }
 0x3ba   : > { %p918_p10 = pnand %p1556_p9, %p1555_p8 }
 0x3bc   : > { %1155 = dma.done.wait (!%p918_p10), %s724_s30, 512  }
 0x3bd   : > { %1157 = vsyncadd (!%p918_p10), %s724_s30, 4294966784  ;;  %s22_s17 = sadd.s32 1, %s1180_s17   ;;  %s1557_s18 = sld [smem:[#allocation17_spill]] }
 0x3be   : > { %p19_p13 = scmp.ge.s32.totalorder %s22_s17, 4   ;;  %s1558_s15 = sld [smem:[#allocation15_spill]] }
 0x3bf   : > { %s1559_s16 = sld [smem:[#allocation16_spill]]  ;;  %s1560_s12 = smov %s1164_s13 }
 0x3c0   : > { %s1561_s13 = smov %s1168_s14  ;;  %21 = sbr.rel (!%p19_p13) target bundleno = 11 (0xb), region = 109 }
 0x3c3   : > { %s1562_s14 = smov %s1557_s18 }
 0x3c7   :  { %729 = vsyncpa [#allocation6], 1 }
 0x3c8   :  { %731 = vsyncpa [#allocation6 + $0x1], 1 }
 0x3c9   :  { %732 = vsyncpa [#allocation9], 1 }
 0x3ca   :  { %734 = vsyncpa [#allocation9 + $0x1], 1 }
 0x3cb   :  { %735 = vsyncpa [#allocation7], 1 }
 0x3cc   :  { %737 = vsyncpa [#allocation7 + $0x1], 1 }

</bundles_post_ra>
